<compile_context>
chip_gen: v5e
topology: v5e:2x2
jax: 0.10.0
libtpu: 0.0.40
codegen_flags: <defaults>
</compile_context>

<pallas_src>
import functools

import numpy as np
import jax
import jax.numpy as jnp
from jax.experimental import pallas as pl
from jax.experimental.pallas import tpu as pltpu


def _mask_loss_kernel(x_ref, t_ref, wh_ref, wwt_ref, out_ref, *, bt, h_first, gw):
    """One batch block: per-channel interp of (x - t) via two shared-matrix
    matmuls, Gram-weighted squared-error partial sum written to out_ref."""
    # x_ref / t_ref : (Bt, 3, Hi, Wi)  native NCHW block
    # wh_ref        : (Ho, Hi)         H-interp matrix (shared by all chans/batches)
    # wwt_ref       : (Wi, Wo)         W-interp matrix transposed (shared)
    # out_ref       : (1, 1, 1)        partial (unscaled) loss for this block
    # gw            : 3x3 nested tuple of Python-float Gram coefficients
    #                 (off-diagonals already doubled).
    wh = wh_ref[...]
    wwt = wwt_ref[...]

    acc = jnp.zeros((1, 1), jnp.float32)
    for b in range(bt):                      # static unroll over batches in block
        f = []
        for c in range(3):                   # static unroll over RGB channels
            d = x_ref[b, c, :, :] - t_ref[b, c, :, :]        # (Hi, Wi)
            if h_first:
                u = jnp.dot(wh, d, preferred_element_type=jnp.float32)   # (Ho, Wi)
                f.append(jnp.dot(u, wwt, preferred_element_type=jnp.float32))
            else:
                u = jnp.dot(d, wwt, preferred_element_type=jnp.float32)  # (Hi, Wo)
                f.append(jnp.dot(wh, u, preferred_element_type=jnp.float32))

        # sum_{c,c'} G[c,c'] * <f_c, f_c'> : 6 weighted elementwise products
        # accumulated into one tile, then a single cross-lane reduction.
        tot = None
        for c in range(3):
            for c2 in range(c, 3):
                term = gw[c][c2] * (f[c] * f[c2])
                tot = term if tot is None else tot + term
        acc = acc + jnp.sum(tot, keepdims=True)

    out_ref[0] = acc


def interp_matrix(n_out, n_in):
    """Caffe Interp (pad_beg=0, pad_end=0): align-corners bilinear matrix."""
    m = np.zeros((n_out, n_in), dtype=np.float32)
    if n_out > 1 and n_in > 1:
        scale = (n_in - 1) / (n_out - 1)
    else:
        scale = 0.0
    src = np.arange(n_out, dtype=np.float64) * scale
    low = np.floor(src).astype(np.int64)
    high = np.minimum(low + 1, n_in - 1)
    w_hi = (src - low).astype(np.float32)
    w_lo = 1.0 - w_hi
    rows = np.arange(n_out)
    np.add.at(m, (rows, low), w_lo)
    np.add.at(m, (rows, high), w_hi)
    return jnp.asarray(m)


def mask_loss(x, targets, wh, wwt, wconv, bias, *, mean, batch_block=1):
    B, C, Hi, Wi = x.shape
    assert C == 3
    Ho = wh.shape[0]
    Wo = wwt.shape[1]
    # bias and per-channel mean cancel exactly in pred_fake - pred_real.
    del bias, mean

    Bt = batch_block
    assert B % Bt == 0, "batch must divide evenly into batch blocks"
    nblk = B // Bt                       # >= 2 for B >= 2 -> both v7x TCs usable

    # fc8_mask weights act on BGR-ordered channels; our features are RGB.
    # The weights are fixed pretrained constants of the module -> bake the
    # 3x3 Gram coefficients as compile-time f32 scalars (exact on the VPU,
    # no per-step scalar extraction from a VMEM tile).
    wr = np.asarray(wconv).astype(np.float64)[:, ::-1]       # (Cout, 3) RGB order
    g = wr.T @ wr                                            # (3, 3) Gram
    gw = tuple(tuple(float(g[c, c2]) * (1.0 if c == c2 else 2.0)
                     for c2 in range(3)) for c in range(3))

    # Matmul order by resize direction: apply the dimension that shrinks the
    # intermediate most first (fewer MXU FLOPs, smaller VMEM intermediate).
    h_first = (Ho * Hi * Wi + Ho * Wi * Wo) <= (Hi * Wi * Wo + Ho * Hi * Wo)

    # Explicit VMEM budget from the per-step block footprint (+ headroom):
    # covers v5e's 16 MiB default scoped limit, stays under v7x's 64 MiB.
    bytes_f32 = 4
    blk_in = Bt * 3 * Hi * Wi * bytes_f32                    # one data block
    mats = (Ho * Hi + Wi * Wo) * bytes_f32                   # wh + wwt
    interm = ((Ho * Wi if h_first else Hi * Wo) + 4 * Ho * Wo) * bytes_f32
    needed = 2 * 2 * blk_in + 2 * mats + interm + (2 << 20)  # double-buffered I/O
    vmem_limit = int(min(max(needed, 32 << 20), 48 << 20))

    kernel = functools.partial(_mask_loss_kernel, bt=Bt, h_first=h_first, gw=gw)

    partial = pl.pallas_call(
        kernel,
        out_shape=jax.ShapeDtypeStruct((nblk, 1, 1), jnp.float32),
        grid_spec=pltpu.PrefetchScalarGridSpec(
            num_scalar_prefetch=0,
            grid=(nblk,),
            in_specs=[
                pl.BlockSpec((Bt, 3, Hi, Wi), lambda i: (i, 0, 0, 0)),  # x
                pl.BlockSpec((Bt, 3, Hi, Wi), lambda i: (i, 0, 0, 0)),  # targets
                pl.BlockSpec((Ho, Hi), lambda i: (0, 0)),               # Wh
                pl.BlockSpec((Wi, Wo), lambda i: (0, 0)),               # Ww^T
            ],
            out_specs=pl.BlockSpec((1, 1, 1), lambda i: (i, 0, 0)),
        ),
        compiler_params=pltpu.CompilerParams(
            dimension_semantics=("parallel",),    # independent partials per block
            vmem_limit_bytes=vmem_limit),
    )(x, targets, wh, wwt)

    # (x+1)*0.5*255 scale factored out of the difference; EuclideanLoss norm.
    scale = (0.5 * 255.0) ** 2
    return jnp.sum(partial) * scale / (2.0 * B)


def mask_loss_ref(x, targets, wh, wwt, wconv, bias, *, mean):
    """Pure-JAX reference: faithful twin-path forward (preprocess both inputs,
    apply the shared fc8_mask head to both, EuclideanLoss between them)."""
    hp = jax.lax.Precision.HIGHEST

    def prep_and_pred(img):
        scaled = (img + 1.0) * (0.5 * 255.0)                    # (B,3,Hi,Wi)
        mean_a = jnp.asarray(mean, jnp.float32)[None, :, None, None]
        sub = scaled - mean_a
        bgr = sub[:, ::-1, :, :]                                # BGR concat
        t = jnp.einsum('oh,bchw->bcow', wh, bgr, precision=hp)  # interp H
        t = jnp.einsum('bchw,wo->bcho', t, wwt, precision=hp)   # interp W
        pred = (jnp.einsum('kc,bchw->bkhw', wconv, t, precision=hp)
                + bias[0][None, :, None, None])
        return pred

    pf = prep_and_pred(x)
    pr = prep_and_pred(targets)
    B = x.shape[0]
    return jnp.sum((pf - pr) ** 2) / (2.0 * B)


if __name__ == "__main__":
    key = jax.random.PRNGKey(0)
    kx, kt, kw, kb = jax.random.split(key, 4)

    B, C, H, W = 2, 3, 16, 16
    size = (16, 16)                                # (height, width)
    mean = (104.008, 116.669, 122.675)             # per-channel preprocess means
    Cout = 8                                       # fc8_mask output channels (proxy)

    x = jax.random.uniform(kx, (B, C, H, W), jnp.float32, -1.0, 1.0)
    targets = jax.random.uniform(kt, (B, C, H, W), jnp.float32, -1.0, 1.0)

    wconv = (jax.random.normal(kw, (Cout, C), jnp.float32) * 0.05).astype(jnp.float32)
    bias = (jax.random.normal(kb, (1, Cout), jnp.float32) * 0.01).astype(jnp.float32)

    wh = interp_matrix(size[0], H)         # (Ho, Hi)
    wwt = interp_matrix(size[1], W).T      # (Wi, Wo)

    loss = mask_loss(x, targets, wh, wwt, wconv, bias, mean=mean)
    loss = jax.block_until_ready(loss)

    ref = jax.block_until_ready(
        mask_loss_ref(x, targets, wh, wwt, wconv, bias, mean=mean))
    np.testing.assert_allclose(np.asarray(loss), np.asarray(ref),
                               rtol=1e-3, atol=1e-2)

    print("KERNEL_OK")
</pallas_src>

<mosaic_0001>
module attributes {stable_mosaic.version = 11 : i64} {
  func.func @_mask_loss_kernel(%arg0: i32, %arg1: memref<1x3x16x16xf32, #tpu.memory_space<vmem>>, %arg2: memref<1x3x16x16xf32, #tpu.memory_space<vmem>>, %arg3: memref<16x16xf32, #tpu.memory_space<vmem>>, %arg4: memref<16x16xf32, #tpu.memory_space<vmem>>, %arg5: memref<1x1x1xf32, #tpu.memory_space<vmem>>) attributes {dimension_semantics = [#tpu.dimension_semantics<parallel>], iteration_bounds = array<i64: 2>, scalar_prefetch = 0 : i64, scratch_operands = 0 : i64, tpu.core_type = #tpu.core_type<tc>, window_params = [{transform_indices = @transform_0, window_bounds = array<i64: 1, 3, 16, 16>}, {transform_indices = @transform_1, window_bounds = array<i64: 1, 3, 16, 16>}, {pipeline_mode = #tpu.pipeline_mode<synchronous>, transform_indices = @transform_2, window_bounds = array<i64: 16, 16>}, {pipeline_mode = #tpu.pipeline_mode<synchronous>, transform_indices = @transform_3, window_bounds = array<i64: 16, 16>}, {transform_indices = @transform_4, window_bounds = array<i64: 1, 1, 1>}]} {
    %c0 = arith.constant 0 : index
    %c0_0 = arith.constant 0 : index
    %0 = vector.load %arg3[%c0, %c0_0] : memref<16x16xf32, #tpu.memory_space<vmem>>, vector<16x16xf32>
    %c0_1 = arith.constant 0 : index
    %c0_2 = arith.constant 0 : index
    %1 = vector.load %arg4[%c0_1, %c0_2] : memref<16x16xf32, #tpu.memory_space<vmem>>, vector<16x16xf32>
    %cst = arith.constant 0.000000e+00 : f32
    %2 = vector.broadcast %cst : f32 to vector<1x1xf32>
    %c0_3 = arith.constant 0 : index
    %c0_4 = arith.constant 0 : index
    %c0_5 = arith.constant 0 : index
    %c0_6 = arith.constant 0 : index
    %3 = vector.load %arg1[%c0_3, %c0_4, %c0_5, %c0_6] : memref<1x3x16x16xf32, #tpu.memory_space<vmem>>, vector<1x1x16x16xf32>
    %4 = vector.shape_cast %3 : vector<1x1x16x16xf32> to vector<16x16xf32>
    %c0_7 = arith.constant 0 : index
    %c0_8 = arith.constant 0 : index
    %c0_9 = arith.constant 0 : index
    %c0_10 = arith.constant 0 : index
    %5 = vector.load %arg2[%c0_7, %c0_8, %c0_9, %c0_10] : memref<1x3x16x16xf32, #tpu.memory_space<vmem>>, vector<1x1x16x16xf32>
    %6 = vector.shape_cast %5 : vector<1x1x16x16xf32> to vector<16x16xf32>
    %7 = arith.subf %4, %6 : vector<16x16xf32>
    %cst_11 = arith.constant dense<0.000000e+00> : vector<16x16xf32>
    %8 = tpu.matmul %0, %7, %cst_11 {dimension_numbers = #tpu.dot_dimension_numbers<[1], [0], [0], [1], [0, 0, 1, 1], [], []>} : vector<16x16xf32>, vector<16x16xf32>, vector<16x16xf32> -> vector<16x16xf32>
    %cst_12 = arith.constant dense<0.000000e+00> : vector<16x16xf32>
    %9 = tpu.matmul %8, %1, %cst_12 {dimension_numbers = #tpu.dot_dimension_numbers<[1], [0], [0], [1], [0, 0, 1, 1], [], []>} : vector<16x16xf32>, vector<16x16xf32>, vector<16x16xf32> -> vector<16x16xf32>
    %c0_13 = arith.constant 0 : index
    %c1 = arith.constant 1 : index
    %c0_14 = arith.constant 0 : index
    %c0_15 = arith.constant 0 : index
    %10 = vector.load %arg1[%c0_13, %c1, %c0_14, %c0_15] : memref<1x3x16x16xf32, #tpu.memory_space<vmem>>, vector<1x1x16x16xf32>
    %11 = vector.shape_cast %10 : vector<1x1x16x16xf32> to vector<16x16xf32>
    %c0_16 = arith.constant 0 : index
    %c1_17 = arith.constant 1 : index
    %c0_18 = arith.constant 0 : index
    %c0_19 = arith.constant 0 : index
    %12 = vector.load %arg2[%c0_16, %c1_17, %c0_18, %c0_19] : memref<1x3x16x16xf32, #tpu.memory_space<vmem>>, vector<1x1x16x16xf32>
    %13 = vector.shape_cast %12 : vector<1x1x16x16xf32> to vector<16x16xf32>
    %14 = arith.subf %11, %13 : vector<16x16xf32>
    %cst_20 = arith.constant dense<0.000000e+00> : vector<16x16xf32>
    %15 = tpu.matmul %0, %14, %cst_20 {dimension_numbers = #tpu.dot_dimension_numbers<[1], [0], [0], [1], [0, 0, 1, 1], [], []>} : vector<16x16xf32>, vector<16x16xf32>, vector<16x16xf32> -> vector<16x16xf32>
    %cst_21 = arith.constant dense<0.000000e+00> : vector<16x16xf32>
    %16 = tpu.matmul %15, %1, %cst_21 {dimension_numbers = #tpu.dot_dimension_numbers<[1], [0], [0], [1], [0, 0, 1, 1], [], []>} : vector<16x16xf32>, vector<16x16xf32>, vector<16x16xf32> -> vector<16x16xf32>
    %c0_22 = arith.constant 0 : index
    %c2 = arith.constant 2 : index
    %c0_23 = arith.constant 0 : index
    %c0_24 = arith.constant 0 : index
    %17 = vector.load %arg1[%c0_22, %c2, %c0_23, %c0_24] : memref<1x3x16x16xf32, #tpu.memory_space<vmem>>, vector<1x1x16x16xf32>
    %18 = vector.shape_cast %17 : vector<1x1x16x16xf32> to vector<16x16xf32>
    %c0_25 = arith.constant 0 : index
    %c2_26 = arith.constant 2 : index
    %c0_27 = arith.constant 0 : index
    %c0_28 = arith.constant 0 : index
    %19 = vector.load %arg2[%c0_25, %c2_26, %c0_27, %c0_28] : memref<1x3x16x16xf32, #tpu.memory_space<vmem>>, vector<1x1x16x16xf32>
    %20 = vector.shape_cast %19 : vector<1x1x16x16xf32> to vector<16x16xf32>
    %21 = arith.subf %18, %20 : vector<16x16xf32>
    %cst_29 = arith.constant dense<0.000000e+00> : vector<16x16xf32>
    %22 = tpu.matmul %0, %21, %cst_29 {dimension_numbers = #tpu.dot_dimension_numbers<[1], [0], [0], [1], [0, 0, 1, 1], [], []>} : vector<16x16xf32>, vector<16x16xf32>, vector<16x16xf32> -> vector<16x16xf32>
    %cst_30 = arith.constant dense<0.000000e+00> : vector<16x16xf32>
    %23 = tpu.matmul %22, %1, %cst_30 {dimension_numbers = #tpu.dot_dimension_numbers<[1], [0], [0], [1], [0, 0, 1, 1], [], []>} : vector<16x16xf32>, vector<16x16xf32>, vector<16x16xf32> -> vector<16x16xf32>
    %24 = arith.mulf %9, %9 : vector<16x16xf32>
    %cst_31 = arith.constant 0.0131103918 : f32
    %25 = vector.broadcast %cst_31 : f32 to vector<16x16xf32>
    %26 = arith.mulf %25, %24 : vector<16x16xf32>
    %27 = arith.mulf %9, %16 : vector<16x16xf32>
    %cst_32 = arith.constant -0.0141187171 : f32
    %28 = vector.broadcast %cst_32 : f32 to vector<16x16xf32>
    %29 = arith.mulf %28, %27 : vector<16x16xf32>
    %30 = arith.addf %26, %29 : vector<16x16xf32>
    %31 = arith.mulf %9, %23 : vector<16x16xf32>
    %cst_33 = arith.constant -0.0292397439 : f32
    %32 = vector.broadcast %cst_33 : f32 to vector<16x16xf32>
    %33 = arith.mulf %32, %31 : vector<16x16xf32>
    %34 = arith.addf %30, %33 : vector<16x16xf32>
    %35 = arith.mulf %16, %16 : vector<16x16xf32>
    %cst_34 = arith.constant 0.00980190281 : f32
    %36 = vector.broadcast %cst_34 : f32 to vector<16x16xf32>
    %37 = arith.mulf %36, %35 : vector<16x16xf32>
    %38 = arith.addf %34, %37 : vector<16x16xf32>
    %39 = arith.mulf %16, %23 : vector<16x16xf32>
    %cst_35 = arith.constant 0.0155788017 : f32
    %40 = vector.broadcast %cst_35 : f32 to vector<16x16xf32>
    %41 = arith.mulf %40, %39 : vector<16x16xf32>
    %42 = arith.addf %38, %41 : vector<16x16xf32>
    %43 = arith.mulf %23, %23 : vector<16x16xf32>
    %cst_36 = arith.constant 0.0232224558 : f32
    %44 = vector.broadcast %cst_36 : f32 to vector<16x16xf32>
    %45 = arith.mulf %44, %43 : vector<16x16xf32>
    %46 = arith.addf %42, %45 : vector<16x16xf32>
    %47 = vector.shape_cast %46 : vector<16x16xf32> to vector<1x16x16xf32>
    %cst_37 = arith.constant dense<0.000000e+00> : vector<1xf32>
    %48 = vector.multi_reduction <add>, %47, %cst_37 [1, 2] : vector<1x16x16xf32> to vector<1xf32>
    %49 = vector.shape_cast %48 : vector<1xf32> to vector<1x1x1xf32>
    %50 = vector.extract %49[0, 0, 0] : f32 from vector<1x1x1xf32>
    %51 = vector.broadcast %50 : f32 to vector<1x1xf32>
    %52 = arith.addf %2, %51 : vector<1x1xf32>
    %c0_38 = arith.constant 0 : index
    %c0_39 = arith.constant 0 : index
    %c0_40 = arith.constant 0 : index
    %53 = vector.load %arg5[%c0_38, %c0_39, %c0_40] : memref<1x1x1xf32, #tpu.memory_space<vmem>>, vector<1x1x1xf32>
    %54 = vector.shape_cast %53 : vector<1x1x1xf32> to vector<1x1xf32>
    %55 = vector.shape_cast %52 : vector<1x1xf32> to vector<1x1x1xf32>
    tpu.vector_store %arg5[%c0_38, %c0_39, %c0_40], %55 {strides = array<i32>} : memref<1x1x1xf32, #tpu.memory_space<vmem>>, vector<1x1x1xf32>,
    return
  }
  func.func @transform_0(%arg0: i32) -> (i32, i32, i32, i32) {
    %c0_i32 = arith.constant 0 : i32
    %c0_i32_0 = arith.constant 0 : i32
    %c0_i32_1 = arith.constant 0 : i32
    %c0_i32_2 = arith.constant 0 : i32
    return %arg0, %c0_i32, %c0_i32_0, %c0_i32_1 : i32, i32, i32, i32
  }
  func.func @transform_1(%arg0: i32) -> (i32, i32, i32, i32) {
    %c0_i32 = arith.constant 0 : i32
    %c0_i32_0 = arith.constant 0 : i32
    %c0_i32_1 = arith.constant 0 : i32
    %c0_i32_2 = arith.constant 0 : i32
    return %arg0, %c0_i32, %c0_i32_0, %c0_i32_1 : i32, i32, i32, i32
  }
  func.func @transform_2(%arg0: i32) -> (i32, i32) {
    %c0_i32 = arith.constant 0 : i32
    %c0_i32_0 = arith.constant 0 : i32
    %c0_i32_1 = arith.constant 0 : i32
    return %c0_i32, %c0_i32_0 : i32, i32
  }
  func.func @transform_3(%arg0: i32) -> (i32, i32) {
    %c0_i32 = arith.constant 0 : i32
    %c0_i32_0 = arith.constant 0 : i32
    %c0_i32_1 = arith.constant 0 : i32
    return %c0_i32, %c0_i32_0 : i32, i32
  }
  func.func @transform_4(%arg0: i32) -> (i32, i32, i32) {
    %c0_i32 = arith.constant 0 : i32
    %c0_i32_0 = arith.constant 0 : i32
    %c0_i32_1 = arith.constant 0 : i32
    return %arg0, %c0_i32, %c0_i32_0 : i32, i32, i32
  }
}

</mosaic_0001>

<bundles_post_ra>
// kernel: tpu_custom_call.1
= control target key start
LH: loop header
LB: loop body
LE: loop exit
PB: predicated region body
PF: predicated region fallthrough
CT: control target
= control target key end

     0   :  { %9 = vsyncpa [#allocation3], 0  ;;  %s1111_s0 = inlined_call_operand.hbm [shape: f32[2,3,16,16], index: 0, kind: input, shape index: {}]   ;;  %s1112_s1 = inlined_call_operand.hbm [shape: f32[2,3,16,16], index: 1, kind: input, shape index: {}]   ;;  %s1113_s2 = inlined_call_operand.hbm [shape: f32[16,16], index: 2, kind: input, shape index: {}]   ;;  %s1114_s3 = inlined_call_operand.hbm [shape: f32[16,16], index: 3, kind: input, shape index: {}]   ;;  %s1115_s4 = inlined_call_operand.vmem [shape: f32[2,1,1], index: 4, kind: output, shape index: {}]  }
   0x1   :  { %11 = vsyncpa [#allocation3 + $0x1], 0 }
   0x2   :  { %12 = vsyncpa [#allocation5], 0 }
   0x3   :  { %14 = vsyncpa [#allocation5 + $0x1], 0 }
   0x4   :  { %15 = vsyncpa [#allocation8], 0  ;;  %s938_s15 = smov 0   ;;  %s940_s16 = smov 0  }
   0x5   :  { %s942_s17 = smov 0   ;;  %s944_s18 = smov 0  }
   0x6 LB: > { %s957_s19 = sadd.s32 4294967295, %s907_s18   ;;  %p41_p0 = scmp.ne.s32.totalorder %s899_s16, %s895_s15  ;;  %s907_s18 = sphi %s944_s18, %s1122_s18   ;;  %s903_s17 = sphi %s942_s17, %s1121_s17   ;;  %s899_s16 = sphi %s940_s16, %s1120_s16   ;;  %s895_s15 = sphi %s938_s15, %s1119_s15  }
   0x7   : > { %p42_p1 = scmp.eq.s32.totalorder %s957_s19, 0  ;;  %p632_p2 = scmp.ge.s32.totalorder %s907_s18, 1 }
   0x8   : > { %p146_p3 = scmp.lt.s32.totalorder %s907_s18, 3  ;;  %s157_s23 = sshll.u32 %s1113_s2, 4  ;;  %s158_s23 = int_to_ptr.hbm [resolvable:$true] %s157_s23 }
   0x9   : > { %p965_p4 = por %p42_p1, %p41_p0  ;;  %s909_s25 = smov [#allocation6]  }
   0xa   : > { %p972_p5 = pnand %p632_p2, %p146_p3  ;;  %s159_s26 = sshll.u32 %s909_s25, 4  ;;  %s160_s26 = int_to_ptr.vmem [resolvable:$true] %s159_s26 }
   0xb   : > { %s171_s29 = sshll.u32 %s1114_s3, 4  ;;  %s910_s30 = smov 128   ;;  %s172_s29 = int_to_ptr.hbm [resolvable:$true] %s171_s29 }
   0xc   : > { %p686_p6 = pneg %p972_p5  ;;  %s911_s5 = smov 8  }
   0xd   : > { %s912_s6 = smov [#allocation7]   ;;  %s990_s8 = sadd.s32 1, %s907_s18  }
   0xe   : > { %p687_p7 = pnand %p686_p6, %p42_p1  ;;  %s173_s7 = sshll.u32 %s912_s6, 4  ;;  %s174_s7 = int_to_ptr.vmem [resolvable:$true] %s173_s7 }
   0xf   : > { %s28_s9 = sadd.s32 1, %s903_s17  ;;  %s25_s10 = ssub.s32 %s907_s18, %s990_s8 }
  0x10   : > { %689 = dma.hbm_to_vmem [thread:$0]  (!%p687_p7), %s158_s23, 256, %s160_s26, [#allocation5], %s910_s30, %s910_s30, %s911_s5  }
  0x11   : > { %692 = dma.hbm_to_vmem [thread:$0]  (!%p687_p7), %s172_s29, 256, %s174_s7, [#allocation8], %s910_s30, %s910_s30, %s911_s5  }
  0x12   : > { %p35_p8 = scmp.ne.s32.totalorder %s903_s17, %s899_s16  ;;  %p26_p9 = scmp.eq.s32.totalorder %s25_s10, 0 }
  0x13   : > { %p36_p10 = scmp.eq.s32.totalorder %s907_s18, 0  ;;  %p702_p11 = scmp.lt.s32.totalorder %s907_s18, 2 }
  0x14   : > { %s187_s11 = sand.u32 1, %s903_s17   ;;  %s209_s14 = sand.u32 1, %s907_s18  }
  0x15   : > { %s1001_s12 = scalar_select %p26_p9, %s903_s17, %s28_s9  }
  0x16   : > { %p37_p12 = por %p36_p10, %p35_p8  ;;  %s1003_s13 = smul.u32 48, %s187_s11 }
  0x17   : > { %s668_s15 = smul.u32 48, %s907_s18  ;;  %s188_s29 = scalar_lea.sflag [#allocation3], %s187_s11 }
  0x18   : > { %p1007_p13 = pnand %p702_p11, %p37_p12  ;;  %s191_s26 = scalar_lea.vmem [#allocation2], %s1003_s13 }
  0x19   : > { %s196_s25 = scalar_lea.hbm %s1111_s0, %s668_s15  ;;  %s199_s27 = sshll.u32 %s191_s26, 4  ;;  %s200_s27 = int_to_ptr.vmem [resolvable:$true] %s199_s27 }
  0x1a   : > { %s197_s28 = sshll.u32 %s196_s25, 4  ;;  %p805_p2 = pneg %p1007_p13  ;;  %s198_s28 = int_to_ptr.hbm [resolvable:$true] %s197_s28 }
  0x1b   : > { %s801_s6 = sshra.s32 %s198_s28, 4  ;;  %s808_s22 = scalar_lea.hbm %s1111_s0, 96  ;;  %s802_s6 = int_to_ptr.hbm [resolvable:$true] %s801_s6 }
  0x1c   : > { %s803_s7 = scalar_lea.hbm %s802_s6, 48  ;;  %p809_p7 = scmp.lt.s32.totalorder %s802_s6, %s1111_s0 }
  0x1d   : > { %p804_p0 = scmp.ne.s32.totalorder %s802_s6, %s803_s7  ;;  %p810_p8 = scmp.lt.s32.totalorder %s808_s22, %s803_s7 }
  0x1f   : > { %p806_p3 = pnand %p805_p2, %p804_p0  ;;  %p811_p9 = por %p810_p8, %p809_p7 }
  0x21   : > { %p807_p6 = pneg %p806_p3 }
  0x23   : > { %p812_p10 = pnand %p811_p9, %p807_p6 }
  0x25   : > { %815 = shalt.err (!%p812_p10)
}
  0x26   : > { %696 = dma.hbm_to_vmem [thread:$0]  (!%p1007_p13), %s198_s28, 768, %s200_s27, %s188_s29, %s910_s30, %s910_s30, %s911_s5  }
  0x27   : > { %s218_s9 = scalar_lea.hbm %s1112_s1, %s668_s15  ;;  %s213_s23 = scalar_lea.vmem [#allocation4], %s1003_s13 }
  0x28   : > { %s219_s10 = sshll.u32 %s218_s9, 4  ;;  %s221_s6 = sshll.u32 %s213_s23, 4  ;;  %s220_s10 = int_to_ptr.hbm [resolvable:$true] %s219_s10  ;;  %s222_s6 = int_to_ptr.vmem [resolvable:$true] %s221_s6 }
  0x29   : > { %s210_s7 = scalar_lea.sflag [#allocation5], %s209_s14  ;;  %s831_s22 = sshra.s32 %s220_s10, 4  ;;  %s832_s22 = int_to_ptr.hbm [resolvable:$true] %s831_s22 }
  0x2a   : > { %s833_s26 = scalar_lea.hbm %s832_s22, 48  ;;  %s838_s29 = scalar_lea.hbm %s1112_s1, 96 }
  0x2b   : > { %p834_p11 = scmp.ne.s32.totalorder %s832_s22, %s833_s26  ;;  %p839_p3 = scmp.lt.s32.totalorder %s832_s22, %s1112_s1 }
  0x2c   : > { %p840_p6 = scmp.lt.s32.totalorder %s838_s29, %s833_s26 }
  0x2d   : > { %p836_p12 = pnand %p834_p11, %p805_p2 }
  0x2e   : > { %p841_p7 = por %p840_p6, %p839_p3 }
  0x2f   : > { %p837_p0 = pneg %p836_p12 }
  0x31   : > { %p842_p8 = pnand %p841_p7, %p837_p0 }
  0x33   : > { %845 = shalt.err (!%p842_p8)
}
  0x34   : > { %699 = dma.hbm_to_vmem [thread:$0]  (!%p1007_p13), %s220_s10, 768, %s222_s6, %s210_s7, %s910_s30, %s910_s30, %s911_s5  }
  0x35   : > { %233 = sbr.rel (%p972_p5) target bundleno = 550 (0x226), region = 36  ;;  %s235_s18 = sand.u32 (!%p972_p5), 1, %s899_s16  }
  0x36   : > { %s671_s13 = smul.u32 (!%p972_p5), 48, %s235_s18  ;;  %s236_s14 = scalar_lea.sflag (!%p972_p5), [#allocation3], %s235_s18 }
  0x38   : > { %s1054_s25 = scalar_lea.vmem (!%p972_p5), [#allocation2], %s671_s13 }
  0x3a   : > { %878 = dma.done.wait (%p965_p4), %s236_s14, 768  }
  0x3b   : > { %880 = vsyncadd (%p965_p4), %s236_s14, 4294966528  ;;  %s245_s21 = sand.u32 1, %s957_s19   ;;  %s249_s30 = scalar_lea.vmem [#allocation4], %s671_s13 }
  0x3c   : > { %s246_s9 = scalar_lea.sflag [#allocation5], %s245_s21 }
  0x3d   : > { %882 = dma.done.wait (%p965_p4), %s246_s9, 768  }
  0x3e   : > { %884 = vsyncadd (%p965_p4), %s246_s9, 4294966528 }
  0x3f   : > { %886 = dma.done.wait (%p42_p1), [#allocation5], 256  }
  0x40   : > { %888 = vsyncadd (%p42_p1), [#allocation5], 4294967040 }
  0x41   : > { %890 = dma.done.wait (%p42_p1), [#allocation8], 256  }
  0x42   : > { %892 = vsyncadd (%p42_p1), [#allocation8], 4294967040  ;;  %v296_v0 = vld [vmem:[%s1054_s25 + $0x8] sm:$0xff]  ;;  %v295_v2 = vld [vmem:[%s1054_s25] sm:$0xff]  ;;  %vm301_vm0 = vcmask 130048   ;;  %p288_p1 = scmp.lt.s32.totalorder %s957_s19, 1 }
  0x43   : > { %v298_v1 = vld [vmem:[%s249_s30 + $0x8] sm:$0xff]  ;;  %v297_v4 = vld [vmem:[%s249_s30] sm:$0xff]  ;;  %v646_v8 = vld [vmem:[%s1054_s25 + $0x18] sm:$0xff]  ;;  %vm528_vm1 = vcmask 0  }
  0x44   : > { %v300_v3 = vsub.f32 %v296_v0, %v298_v1  ;;  %v291_v5 = vld [vmem:[#allocation6] sm:$0xff]  ;;  %v292_v6 = vld [vmem:[#allocation6 + $0x8] sm:$0xff]  ;;  %v299_v7 = vsub.f32 %v295_v2, %v297_v4  ;;  %v294_v20 = vld [vmem:[#allocation7 + $0x8] sm:$0xff]  ;;  %s1124_s19 = smov (!%p288_p1, %s957_s19), 1 }
  0x45   : > { %v648_v9 = vld [vmem:[%s249_s30 + $0x18] sm:$0xff]  ;;  %v645_v10 = vld [vmem:[%s1054_s25 + $0x10] sm:$0xff]  ;;  %v654_v13 = vld [vmem:[%s1054_s25 + $0x28] sm:$0xff]  ;;  %351 = vmatpush.msra.mxu1 %v294_v20  ;;  %665 = vmatpush.msra.mxu3 %v294_v20  ;;  %s290_s5 = scalar_lea.vmem %s1115_s4, %s1124_s19 }
  0x46   : > { %322 = vmatpush.msra.mxu0 %v300_v3  ;;  %663 = vmatpush.msra.mxu2 %v300_v3  ;;  %v367_v11 = vsub.f32 %v646_v8, %v648_v9  ;;  %v647_v12 = vld [vmem:[%s249_s30 + $0x10] sm:$0xff]  ;;  %v656_v14 = vld [vmem:[%s249_s30 + $0x28] sm:$0xff]  ;;  %v653_v16 = vld [vmem:[%s1054_s25 + $0x20] sm:$0xff] }
  0x47   : > { %v427_v15 = vsub.f32 %v654_v13, %v656_v14  ;;  %v655_v17 = vld [vmem:[%s249_s30 + $0x20] sm:$0xff]  ;;  %v366_v18 = vsub.f32 %v645_v10, %v647_v12 }
  0x48   : > { %323 = vmatpush.msra.mxu0 %v299_v7  ;;  %664 = vmatpush.msra.mxu2 %v299_v7  ;;  %v426_v19 = vsub.f32 %v653_v16, %v655_v17  ;;  %v293_v21 = vld [vmem:[#allocation7] sm:$0xff] }
  0x49   : > { %641 = vmatmul.msk.f32.vlgmr.msra.gmra.mxu0 %vm301_vm0, %v291_v5  ;;  %642 = vmatmul.msk.f32.vlgmr.msra.gmra.mxu2 %vm301_vm0, %v292_v6 }
  0x4a   : > { %382 = vmatpush.msrb.mxu2 %v367_v11  ;;  %442 = vmatpush.msrb.mxu0 %v427_v15 }
  0x4b   : > { %352 = vmatpush.msra.mxu1 %v293_v21  ;;  %666 = vmatpush.msra.mxu3 %v293_v21 }
  0x4c   : > { %383 = vmatpush.msrb.mxu2 %v366_v18  ;;  %443 = vmatpush.msrb.mxu0 %v426_v19 }
  0x4d   : > { %471 = vmatpush.msrb.mxu1 %v294_v20  ;;  %411 = vmatpush.msrb.mxu3 %v294_v20 }
  0x4f   : > { %472 = vmatpush.msrb.mxu1 %v293_v21  ;;  %412 = vmatpush.msrb.mxu3 %v293_v21 }
  0x51   : > { %649 = vmatmul.msk.f32.vlgmr.msrb.gmra.mxu2 %vm301_vm0, %v291_v5  ;;  %657 = vmatmul.msk.f32.vlgmr.msrb.gmra.mxu0 %vm301_vm0, %v291_v5 }
  0x59   : > { %650 = vmatmul.msk.f32.gmra.mxu2 %vm301_vm0, %v292_v6  ;;  %658 = vmatmul.msk.f32.gmra.mxu0 %vm301_vm0, %v292_v6 }
  0xc6   : > { %v325_v22 = vpop.f32.mrf.mxu0 }
  0xc7   : > { %643 = vmatmul.msk.f32.vlgmr.msra.gmra.mxu1 %vm301_vm0, %v325_v22 }
  0xcc   : > { %v328_v23 = vpop.f32.mrf.mxu2 }
  0xcd   : > { %644 = vmatmul.msk.f32.vlgmr.msra.gmra.mxu3 %vm301_vm0, %v328_v23 }
  0xce   : > { %v445_v24 = vpop.f32.mrf.mxu0 }
  0xcf   : > { %659 = vmatmul.msk.f32.vlgmr.msrb.gmra.mxu1 %vm301_vm0, %v445_v24 }
  0xd4   : > { %v385_v25 = vpop.f32.mrf.mxu2 }
  0xd5   : > { %651 = vmatmul.msk.f32.vlgmr.msrb.gmra.mxu3 %vm301_vm0, %v385_v25 }
  0xd6   : > { %v448_v26 = vpop.f32.mrf.mxu0 }
  0xd7   : > { %660 = vmatmul.msk.f32.gmra.mxu1 %vm301_vm0, %v448_v26 }
  0xdc   : > { %v388_v27 = vpop.f32.mrf.mxu2 }
  0xdd   : > { %652 = vmatmul.msk.f32.gmra.mxu3 %vm301_vm0, %v388_v27 }
 0x144   : > { %v354_v28 = vpop.f32.mrf.mxu1 }
 0x145   : > { %v480_v31 = vmul.f32 %v354_v28, %v354_v28 }
 0x147   : > { %v482_v35 = vmul.f32 0.013110392, %v480_v31 }
 0x14c   : > { %v474_v30 = vpop.f32.mrf.mxu1 }
 0x14d   : > { %v490_v33 = vmul.f32 %v474_v30, %v354_v28  ;;  %v508_v52 = vmul.f32 %v474_v30, %v474_v30 }
 0x14f   : > { %v492_v37 = vmul.f32 -0.029239744, %v490_v33  ;;  %v510_v61 = vmul.f32 0.023222456, %v508_v52 }
 0x150   : > { %v357_v29 = vpop.f32.mrf.mxu3 }
 0x151   : > { %v481_v41 = vmul.f32 %v357_v29, %v357_v29 }
 0x153   : > { %v483_v48 = vmul.f32 0.013110392, %v481_v41 }
 0x154   : > { %v477_v40 = vpop.f32.mrf.mxu1 }
 0x155   : > { %v491_v44 = vmul.f32 %v477_v40, %v357_v29  ;;  %v509_v57 = vmul.f32 %v477_v40, %v477_v40 }
 0x157   : > { %v493_v53 = vmul.f32 -0.029239744, %v491_v44  ;;  %v511_v0 = vmul.f32 0.023222456, %v509_v57 }
 0x158   : > { %v414_v32 = vpop.f32.mrf.mxu3 }
 0x159   : > { %v484_v34 = vmul.f32 %v414_v32, %v354_v28  ;;  %v496_v39 = vmul.f32 %v414_v32, %v414_v32  ;;  %v502_v46 = vmul.f32 %v474_v30, %v414_v32 }
 0x15b   : > { %v486_v36 = vmul.f32 -0.014118717, %v484_v34  ;;  %v498_v45 = vmul.f32 0.009801903, %v496_v39  ;;  %v504_v54 = vmul.f32 0.015578802, %v502_v46 }
 0x15d   : > { %v488_v38 = vadd.f32 %v486_v36, %v482_v35 }
 0x15f   : > { %v494_v42 = vadd.f32 %v492_v37, %v488_v38 }
 0x160   : > { %v417_v43 = vpop.f32.mrf.mxu3 }
 0x161   : > { %v485_v47 = vmul.f32 %v417_v43, %v357_v29  ;;  %v500_v49 = vadd.f32 %v498_v45, %v494_v42  ;;  %v497_v51 = vmul.f32 %v417_v43, %v417_v43  ;;  %v503_v56 = vmul.f32 %v477_v40, %v417_v43 }
 0x163   : > { %v487_v50 = vmul.f32 -0.014118717, %v485_v47  ;;  %v499_v59 = vmul.f32 0.009801903, %v497_v51  ;;  %v506_v60 = vadd.f32 %v504_v54, %v500_v49  ;;  %v505_v63 = vmul.f32 0.015578802, %v503_v56 }
 0x165   : > { %v489_v55 = vadd.f32 %v487_v50, %v483_v48  ;;  %v512_v2 = vadd.f32 %v510_v61, %v506_v60 }
 0x167   : > { %v495_v58 = vadd.f32 %v493_v53, %v489_v55  ;;  %v514_v4 = vsel %vm301_vm0, %v512_v2, 0.0 }
 0x169   : > { %v501_v62 = vadd.f32 %v499_v59, %v495_v58 }
 0x16b   : > { %v507_v1 = vadd.f32 %v505_v63, %v501_v62 }
 0x16d   : > { %v513_v3 = vadd.f32 %v511_v0, %v507_v1 }
 0x16f   : > { %v515_v5 = vsel %vm301_vm0, %v513_v3, 0.0 }
 0x170   : > { %v516_v6 = vadd.f32 %v515_v5, %v514_v4 }
 0x172   : > { %517 = vadd.xlane.f32.xlu0 %v516_v6 }
 0x1e5   : > { %v518_v7 = vpop.xlane.xlu0 %517 }
 0x1e6   : > { %v519_v8 = vrot.slane %v518_v7, 4 }
 0x1e8   : > { %v520_v9 = vadd.f32 %v519_v8, %v518_v7 }
 0x1ea   : > { %v521_v10 = vrot.slane %v520_v9, 2 }
 0x1ec   : > { %v522_v11 = vadd.f32 %v521_v10, %v520_v9 }
 0x1ee   : > { %v523_v12 = vrot.slane %v522_v11, 1 }
 0x1f0   : > { %v524_v13 = vadd.f32 %v523_v12, %v522_v11 }
 0x1f2   : > { %672 = vpush %v524_v13 }
 0x223   : > { %s673_s10 = spop %672 }
 0x224   : > { %v526_v14 = vstv %s673_s10 }
 0x225   : > { %529 = vst.msk [vmem:[%s290_s5] sm:$0x1] %vm528_vm1, %v526_v14 }
 0x226 PF: > { %p18_p4 = scmp.ge.s32.totalorder %s990_s8, 4   ;;  %s1119_s15 = smov %s899_s16 }
 0x227   : > { %s1120_s16 = smov %s903_s17  ;;  %s1121_s17 = smov %s1001_s12 }
 0x228   : > { %s1122_s18 = smov %s990_s8  ;;  %20 = sbr.rel (!%p18_p4) target bundleno = 6 (0x6), region = 101 }
 0x22d   :  { %547 = vsyncpa [#allocation3], 1 }
 0x22e   :  { %549 = vsyncpa [#allocation3 + $0x1], 1 }
 0x22f   :  { %550 = vsyncpa [#allocation5], 1 }
 0x230   :  { %552 = vsyncpa [#allocation5 + $0x1], 1 }
 0x231   :  { %553 = vsyncpa [#allocation8], 1 }

</bundles_post_ra>
